<compile_context>
chip_gen: v5e
topology: v5e:2x2
jax: 0.10.0
libtpu: 0.0.40
codegen_flags: <defaults>
</compile_context>

<pallas_src>
import numpy as np
import jax
import jax.numpy as jnp
from jax.experimental import pallas as pl
from jax.experimental.pallas import tpu as pltpu

# ----- hyperparameters (the PyTorch module reads d_k as a global) -----
d_k = 8
d_v = 8
NEG_INF = np.float32(-1e9)


def sdpa_kernel(q_ref, k_ref, v_ref, bias_ref, ctx_ref, attn_ref):
    Bt, H, S, dk = q_ref.shape
    dv = v_ref.shape[-1]
    BH = Bt * H

    # Leading-dim-only reshapes (no relayout): fold (Bt, H) into one batch dim.
    scale = np.float32(1.0 / np.sqrt(d_k))
    q = q_ref[...].reshape(BH, S, dk) * scale          # scale folded into Q once
    k = k_ref[...].reshape(BH, S, dk)
    v = v_ref[...].reshape(BH, S, dv)
    bias = bias_ref[...].reshape(BH, S, S)             # additive mask (-1e9 where masked)

    # One head-batched MXU contraction for the scores (no per-head lane slices).
    scores = jnp.einsum("bqd,bkd->bqk", q, k,
                        preferred_element_type=jnp.float32) + bias

    # Softmax along the key axis (exact reciprocal: approx=True failed the
    # 2e-3 correctness tolerance and this kernel is not EUP-bound).
    m = jnp.max(scores, axis=-1, keepdims=True)
    e = jnp.exp(scores - m)
    denom = jnp.sum(e, axis=-1, keepdims=True)
    attn = e / denom

    # One head-batched MXU contraction for the context.
    ctx = jnp.einsum("bqk,bkd->bqd", attn, v,
                     preferred_element_type=jnp.float32)

    # Single whole-block store per output per grid step.
    attn_ref[...] = attn.reshape(Bt, H, S, S)
    ctx_ref[...] = ctx.reshape(Bt, H, S, dv)


def scaled_dot_product_attention(Q, K, V, attn_mask, *, batch_block=None):
    """Q, K: [B, H, S, d_k]; V: [B, H, S, d_v]; attn_mask: [B, H, S, S] bool
    (True = masked). Returns (context [B, H, S, d_v], attn [B, H, S, S])."""
    B, H, S, dk = Q.shape
    dv = V.shape[-1]

    if batch_block is None:
        # Keep >= 2 grid steps so both v7x TensorCores get work; on 1-TC chips
        # (v5e/v6e) a single full-batch block would amortize step overhead more.
        batch_block = max(1, B // 2)
    Bt = batch_block
    assert B % Bt == 0, "batch_block must divide B"
    grid = (B // Bt,)

    # Additive mask precomputed once in the wrapper (removes per-step
    # compare+select; identical post-softmax to masked_fill since exp
    # underflows to exactly 0 at -1e9).
    bias = attn_mask.astype(jnp.float32) * NEG_INF

    in_specs = [
        pl.BlockSpec((Bt, H, S, dk), lambda b: (b, 0, 0, 0)),   # Q
        pl.BlockSpec((Bt, H, S, dk), lambda b: (b, 0, 0, 0)),   # K
        pl.BlockSpec((Bt, H, S, dv), lambda b: (b, 0, 0, 0)),   # V
        pl.BlockSpec((Bt, H, S, S), lambda b: (b, 0, 0, 0)),    # additive mask
    ]
    out_specs = (
        pl.BlockSpec((Bt, H, S, dv), lambda b: (b, 0, 0, 0)),   # context
        pl.BlockSpec((Bt, H, S, S), lambda b: (b, 0, 0, 0)),    # attn
    )
    out_shape = (
        jax.ShapeDtypeStruct((B, H, S, dv), jnp.float32),
        jax.ShapeDtypeStruct((B, H, S, S), jnp.float32),
    )

    # Advisory cost hint: 2 batched matmuls + softmax exp.
    flops = 2 * B * H * S * S * (dk + dv)
    transcendentals = B * H * S * S
    bytes_accessed = 4 * (Q.size + K.size + V.size + bias.size
                          + B * H * S * dv + B * H * S * S)
    cost = pl.CostEstimate(flops=flops, transcendentals=transcendentals,
                           bytes_accessed=bytes_accessed)

    ctx, attn = pl.pallas_call(
        sdpa_kernel,
        grid=grid,
        in_specs=in_specs,
        out_specs=out_specs,
        out_shape=out_shape,
        compiler_params=pltpu.CompilerParams(dimension_semantics=("parallel",)),
        cost_estimate=cost,
    )(Q, K, V, bias)
    return ctx, attn


def reference(Q, K, V, attn_mask):
    """Pure-JAX reference mirroring the PyTorch forward (masked_fill semantics)."""
    scores = jnp.einsum("bhqd,bhkd->bhqk", Q, K) / np.sqrt(d_k)
    scores = jnp.where(attn_mask, NEG_INF, scores)
    attn = jax.nn.softmax(scores, axis=-1)
    context = jnp.einsum("bhqk,bhkd->bhqd", attn, V)
    return context, attn


if __name__ == "__main__":
    B, H, S = 2, 4, 8
    key = jax.random.PRNGKey(0)
    kq, kk, kv = jax.random.split(key, 3)

    Q = jax.random.normal(kq, (B, H, S, d_k), jnp.float32)
    K = jax.random.normal(kk, (B, H, S, d_k), jnp.float32)
    V = jax.random.normal(kv, (B, H, S, d_v), jnp.float32)
    # causal-style mask: True == masked (future positions)
    causal = jnp.triu(jnp.ones((S, S), dtype=bool), k=1)
    attn_mask = jnp.broadcast_to(causal, (B, H, S, S))

    ctx, attn = scaled_dot_product_attention(Q, K, V, attn_mask)
    ctx = jax.block_until_ready(ctx)
    attn = jax.block_until_ready(attn)

    ctx_ref, attn_ref = reference(Q, K, V, attn_mask)
    assert ctx.shape == (B, H, S, d_v) and attn.shape == (B, H, S, S)
    np.testing.assert_allclose(np.asarray(attn), np.asarray(attn_ref),
                               rtol=2e-3, atol=2e-3)
    np.testing.assert_allclose(np.asarray(ctx), np.asarray(ctx_ref),
                               rtol=2e-3, atol=2e-3)

    print("KERNEL_OK")
</pallas_src>

<mosaic_0001>
module attributes {stable_mosaic.version = 11 : i64} {
  func.func @sdpa_kernel(%arg0: i32, %arg1: memref<1x4x8x8xf32, #tpu.memory_space<vmem>>, %arg2: memref<1x4x8x8xf32, #tpu.memory_space<vmem>>, %arg3: memref<1x4x8x8xf32, #tpu.memory_space<vmem>>, %arg4: memref<1x4x8x8xf32, #tpu.memory_space<vmem>>, %arg5: memref<1x4x8x8xf32, #tpu.memory_space<vmem>>, %arg6: memref<1x4x8x8xf32, #tpu.memory_space<vmem>>) attributes {dimension_semantics = [#tpu.dimension_semantics<parallel>], iteration_bounds = array<i64: 2>, scalar_prefetch = 0 : i64, scratch_operands = 0 : i64, tpu.core_type = #tpu.core_type<tc>, window_params = [{transform_indices = @transform_0, window_bounds = array<i64: 1, 4, 8, 8>}, {transform_indices = @transform_1, window_bounds = array<i64: 1, 4, 8, 8>}, {transform_indices = @transform_2, window_bounds = array<i64: 1, 4, 8, 8>}, {transform_indices = @transform_3, window_bounds = array<i64: 1, 4, 8, 8>}, {transform_indices = @transform_4, window_bounds = array<i64: 1, 4, 8, 8>}, {transform_indices = @transform_5, window_bounds = array<i64: 1, 4, 8, 8>}]} {
    %c0 = arith.constant 0 : index
    %c0_0 = arith.constant 0 : index
    %c0_1 = arith.constant 0 : index
    %c0_2 = arith.constant 0 : index
    %0 = vector.load %arg1[%c0, %c0_0, %c0_1, %c0_2] : memref<1x4x8x8xf32, #tpu.memory_space<vmem>>, vector<1x4x8x8xf32>
    %1 = vector.shape_cast %0 : vector<1x4x8x8xf32> to vector<4x8x8xf32>
    %cst = arith.constant 0.353553385 : f32
    %2 = vector.broadcast %cst : f32 to vector<4x8x8xf32>
    %3 = arith.mulf %1, %2 : vector<4x8x8xf32>
    %c0_3 = arith.constant 0 : index
    %c0_4 = arith.constant 0 : index
    %c0_5 = arith.constant 0 : index
    %c0_6 = arith.constant 0 : index
    %4 = vector.load %arg2[%c0_3, %c0_4, %c0_5, %c0_6] : memref<1x4x8x8xf32, #tpu.memory_space<vmem>>, vector<1x4x8x8xf32>
    %5 = vector.shape_cast %4 : vector<1x4x8x8xf32> to vector<4x8x8xf32>
    %c0_7 = arith.constant 0 : index
    %c0_8 = arith.constant 0 : index
    %c0_9 = arith.constant 0 : index
    %c0_10 = arith.constant 0 : index
    %6 = vector.load %arg3[%c0_7, %c0_8, %c0_9, %c0_10] : memref<1x4x8x8xf32, #tpu.memory_space<vmem>>, vector<1x4x8x8xf32>
    %7 = vector.shape_cast %6 : vector<1x4x8x8xf32> to vector<4x8x8xf32>
    %c0_11 = arith.constant 0 : index
    %c0_12 = arith.constant 0 : index
    %c0_13 = arith.constant 0 : index
    %c0_14 = arith.constant 0 : index
    %8 = vector.load %arg4[%c0_11, %c0_12, %c0_13, %c0_14] : memref<1x4x8x8xf32, #tpu.memory_space<vmem>>, vector<1x4x8x8xf32>
    %9 = vector.shape_cast %8 : vector<1x4x8x8xf32> to vector<4x8x8xf32>
    "tpu.trace_start"() <{level = 10 : i32, message = "bqd,bkd->bqk"}> : () -> ()
    %cst_15 = arith.constant dense<0.000000e+00> : vector<4x8x8xf32>
    %10 = tpu.matmul %3, %5, %cst_15 {dimension_numbers = #tpu.dot_dimension_numbers<[2], [2], [1], [1], [0, 0, 0, 1, 1, 1], [0], [0]>} : vector<4x8x8xf32>, vector<4x8x8xf32>, vector<4x8x8xf32> -> vector<4x8x8xf32>
    "tpu.trace_stop"() : () -> ()
    %11 = arith.addf %10, %9 : vector<4x8x8xf32>
    %cst_16 = arith.constant dense<0xFF800000> : vector<4x8xf32>
    %12 = vector.multi_reduction <maximumf>, %11, %cst_16 [2] : vector<4x8x8xf32> to vector<4x8xf32>
    %13 = vector.shape_cast %12 : vector<4x8xf32> to vector<4x8x1xf32>
    %14 = vector.broadcast %13 : vector<4x8x1xf32> to vector<4x8x8xf32>
    %15 = arith.subf %11, %14 : vector<4x8x8xf32>
    %16 = math.exp %15 : vector<4x8x8xf32>
    %cst_17 = arith.constant dense<0.000000e+00> : vector<4x8xf32>
    %17 = vector.multi_reduction <add>, %16, %cst_17 [2] : vector<4x8x8xf32> to vector<4x8xf32>
    %18 = vector.shape_cast %17 : vector<4x8xf32> to vector<4x8x1xf32>
    %19 = vector.broadcast %18 : vector<4x8x1xf32> to vector<4x8x8xf32>
    %20 = arith.divf %16, %19 : vector<4x8x8xf32>
    "tpu.trace_start"() <{level = 10 : i32, message = "bqk,bkd->bqd"}> : () -> ()
    %cst_18 = arith.constant dense<0.000000e+00> : vector<4x8x8xf32>
    %21 = tpu.matmul %20, %7, %cst_18 {dimension_numbers = #tpu.dot_dimension_numbers<[2], [1], [1], [2], [0, 0, 0, 1, 1, 2], [0], [0]>} : vector<4x8x8xf32>, vector<4x8x8xf32>, vector<4x8x8xf32> -> vector<4x8x8xf32>
    "tpu.trace_stop"() : () -> ()
    %22 = vector.shape_cast %20 : vector<4x8x8xf32> to vector<1x4x8x8xf32>
    %c0_19 = arith.constant 0 : index
    %c0_20 = arith.constant 0 : index
    %c0_21 = arith.constant 0 : index
    %c0_22 = arith.constant 0 : index
    %23 = vector.load %arg6[%c0_19, %c0_20, %c0_21, %c0_22] : memref<1x4x8x8xf32, #tpu.memory_space<vmem>>, vector<1x4x8x8xf32>
    tpu.vector_store %arg6[%c0_19, %c0_20, %c0_21, %c0_22], %22 {strides = array<i32>} : memref<1x4x8x8xf32, #tpu.memory_space<vmem>>, vector<1x4x8x8xf32>,
    %24 = vector.shape_cast %21 : vector<4x8x8xf32> to vector<1x4x8x8xf32>
    %c0_23 = arith.constant 0 : index
    %c0_24 = arith.constant 0 : index
    %c0_25 = arith.constant 0 : index
    %c0_26 = arith.constant 0 : index
    %25 = vector.load %arg5[%c0_23, %c0_24, %c0_25, %c0_26] : memref<1x4x8x8xf32, #tpu.memory_space<vmem>>, vector<1x4x8x8xf32>
    tpu.vector_store %arg5[%c0_23, %c0_24, %c0_25, %c0_26], %24 {strides = array<i32>} : memref<1x4x8x8xf32, #tpu.memory_space<vmem>>, vector<1x4x8x8xf32>,
    return
  }
  func.func @transform_0(%arg0: i32) -> (i32, i32, i32, i32) {
    %c0_i32 = arith.constant 0 : i32
    %c0_i32_0 = arith.constant 0 : i32
    %c0_i32_1 = arith.constant 0 : i32
    %c0_i32_2 = arith.constant 0 : i32
    return %arg0, %c0_i32, %c0_i32_0, %c0_i32_1 : i32, i32, i32, i32
  }
  func.func @transform_1(%arg0: i32) -> (i32, i32, i32, i32) {
    %c0_i32 = arith.constant 0 : i32
    %c0_i32_0 = arith.constant 0 : i32
    %c0_i32_1 = arith.constant 0 : i32
    %c0_i32_2 = arith.constant 0 : i32
    return %arg0, %c0_i32, %c0_i32_0, %c0_i32_1 : i32, i32, i32, i32
  }
  func.func @transform_2(%arg0: i32) -> (i32, i32, i32, i32) {
    %c0_i32 = arith.constant 0 : i32
    %c0_i32_0 = arith.constant 0 : i32
    %c0_i32_1 = arith.constant 0 : i32
    %c0_i32_2 = arith.constant 0 : i32
    return %arg0, %c0_i32, %c0_i32_0, %c0_i32_1 : i32, i32, i32, i32
  }
  func.func @transform_3(%arg0: i32) -> (i32, i32, i32, i32) {
    %c0_i32 = arith.constant 0 : i32
    %c0_i32_0 = arith.constant 0 : i32
    %c0_i32_1 = arith.constant 0 : i32
    %c0_i32_2 = arith.constant 0 : i32
    return %arg0, %c0_i32, %c0_i32_0, %c0_i32_1 : i32, i32, i32, i32
  }
  func.func @transform_4(%arg0: i32) -> (i32, i32, i32, i32) {
    %c0_i32 = arith.constant 0 : i32
    %c0_i32_0 = arith.constant 0 : i32
    %c0_i32_1 = arith.constant 0 : i32
    %c0_i32_2 = arith.constant 0 : i32
    return %arg0, %c0_i32, %c0_i32_0, %c0_i32_1 : i32, i32, i32, i32
  }
  func.func @transform_5(%arg0: i32) -> (i32, i32, i32, i32) {
    %c0_i32 = arith.constant 0 : i32
    %c0_i32_0 = arith.constant 0 : i32
    %c0_i32_1 = arith.constant 0 : i32
    %c0_i32_2 = arith.constant 0 : i32
    return %arg0, %c0_i32, %c0_i32_0, %c0_i32_1 : i32, i32, i32, i32
  }
}

</mosaic_0001>

<bundles_post_ra>
// kernel: tpu_custom_call.1
= control target key start
LH: loop header
LB: loop body
LE: loop exit
PB: predicated region body
PF: predicated region fallthrough
CT: control target
= control target key end

     0   :  { %s1611_s0 = inlined_call_operand.hbm [shape: f32[2,4,8,8], index: 0, kind: input, shape index: {}]   ;;  %s1612_s1 = inlined_call_operand.hbm [shape: f32[2,4,8,8], index: 1, kind: input, shape index: {}]   ;;  %s1613_s2 = inlined_call_operand.hbm [shape: f32[2,4,8,8], index: 2, kind: input, shape index: {}]   ;;  %s1614_s3 = inlined_call_operand.hbm [shape: f32[2,4,8,8], index: 3, kind: input, shape index: {}]   ;;  %s1615_s4 = inlined_call_operand.hbm [shape: f32[2,4,8,8], index: 4, kind: output, shape index: {0}]   ;;  %s1616_s5 = inlined_call_operand.hbm [shape: f32[2,4,8,8], index: 5, kind: output, shape index: {1}]  }
   0x1   :  { %1623 = sst [smem:[#allocation22_spill]] %s1611_s0 }
   0x2   :  { %1624 = sst [smem:[#allocation23_spill]] %s1612_s1 }
   0x3   :  { %11 = vsyncpa [#allocation3], 0 }
   0x4   :  { %13 = vsyncpa [#allocation3 + $0x1], 0 }
   0x5   :  { %14 = vsyncpa [#allocation6], 0 }
   0x6   :  { %16 = vsyncpa [#allocation6 + $0x1], 0 }
   0x7   :  { %17 = vsyncpa [#allocation9], 0 }
   0x8   :  { %19 = vsyncpa [#allocation9 + $0x1], 0 }
   0x9   :  { %20 = vsyncpa [#allocation4], 0 }
   0xa   :  { %22 = vsyncpa [#allocation4 + $0x1], 0 }
   0xb   :  { %23 = vsyncpa [#allocation12], 0 }
   0xc   :  { %25 = vsyncpa [#allocation12 + $0x1], 0  ;;  %s1306_s18 = smov 0   ;;  %s1308_s19 = smov 0  }
   0xd   :  { %s1310_s20 = smov 0   ;;  %s1312_s21 = smov 0  }
   0xe LB: > { %1625 = sst [smem:[#allocation18_spill]] %s1266_s20  ;;  %s1327_s22 = sadd.s32 4294967295, %s1270_s21   ;;  %s1270_s21 = sphi %s1312_s21, %s1638_s21   ;;  %s1266_s20 = sphi %s1310_s20, %s1640_s20   ;;  %s1262_s19 = sphi %s1308_s19, %s1642_s19   ;;  %s1258_s18 = sphi %s1306_s18, %s1641_s18  }
   0xf   : > { %1626 = sst [smem:[#allocation19_spill]] %s1270_s21  ;;  %s910_s23 = sadd.s32 4294967294, %s1270_s21  }
  0x10   : > { %s1331_s24 = sadd.s32 1, %s1270_s21   ;;  %s38_s25 = sadd.s32 1, %s1266_s20 }
  0x11   : > { %1627 = sst [smem:[#allocation20_spill]] %s1331_s24  ;;  %s35_s26 = ssub.s32 %s1270_s21, %s1331_s24 }
  0x12   : > { %p45_p0 = scmp.ne.s32.totalorder %s1266_s20, %s1262_s19  ;;  %p36_p1 = scmp.eq.s32.totalorder %s35_s26, 0 }
  0x13   : > { %p46_p2 = scmp.eq.s32.totalorder %s1270_s21, 0  ;;  %p51_p3 = scmp.ne.s32.totalorder %s1262_s19, %s1258_s18 }
  0x14   : > { %p52_p4 = scmp.eq.s32.totalorder %s1327_s22, 0  ;;  %p153_p7 = scmp.eq.s32.totalorder %s1327_s22, 1 }
  0x15   : > { %s1343_s27 = scalar_select %p36_p1, %s1266_s20, %s38_s25  }
  0x16   : > { %p47_p5 = por %p46_p2, %p45_p0  ;;  %p1345_p6 = por %p52_p4, %p51_p3 }
  0x17   : > { %1628 = sst [smem:[#allocation21_spill]] %s1343_s27  ;;  %p159_p8 = scmp.eq.s32.totalorder %s910_s23, 1 }
  0x18   : > { %p912_p9 = scmp.ge.s32.totalorder %s1270_s21, 2  ;;  %p990_p10 = scmp.lt.s32.totalorder %s1270_s21, 2 }
  0x19   : > { %p1352_p11 = por %p153_p7, %p45_p0  ;;  %p1356_p12 = por %p159_p8, %p51_p3 }
  0x1a   : > { %s1361_s6 = sand.u32 1, %s1266_s20   ;;  %s1364_s7 = sshll.u32 %s1270_s21, 5 }
  0x1b   : > { %s1367_s8 = sshll.u32 %s1361_s6, 5  ;;  %p1369_p13 = pnand %p990_p10, %p47_p5 }
  0x1c   : > { %s227_s10 = sand.u32 1, %s1270_s21   ;;  %s1633_s1 = sld [smem:[#allocation23_spill]] }
  0x1d   : > { %s231_s14 = scalar_lea.vmem [#allocation5], %s1367_s8  ;;  %p925_p0 = scmp.ge.s32.totalorder %s1270_s21, 1 }
  0x1e   : > { %s239_s15 = sshll.u32 %s231_s14, 4  ;;  %s1380_s17 = scalar_lea.sflag [#allocation6], %s227_s10  ;;  %s240_s15 = int_to_ptr.vmem [resolvable:$true] %s239_s15 }
  0x1f   : > { %p1048_p2 = pneg %p1369_p13 }
  0x22   : > { %s236_s13 = scalar_lea.hbm %s1633_s1, %s1364_s7  ;;  %s1051_s12 = scalar_lea.hbm %s1633_s1, 64 }
  0x23   : > { %s237_s16 = sshll.u32 %s236_s13, 4  ;;  %s238_s16 = int_to_ptr.hbm [resolvable:$true] %s237_s16 }
  0x24   : > { %s1044_s23 = sshra.s32 %s238_s16, 4  ;;  %s1045_s23 = int_to_ptr.hbm [resolvable:$true] %s1044_s23 }
  0x25   : > { %s1046_s25 = scalar_lea.hbm %s1045_s23, 32  ;;  %p1052_p5 = scmp.lt.s32.totalorder %s1045_s23, %s1633_s1 }
  0x26   : > { %p1047_p1 = scmp.ne.s32.totalorder %s1045_s23, %s1046_s25  ;;  %p1053_p7 = scmp.lt.s32.totalorder %s1051_s12, %s1046_s25 }
  0x28   : > { %p1049_p3 = pnand %p1048_p2, %p1047_p1  ;;  %p1054_p8 = por %p1053_p7, %p1052_p5 }
  0x2a   : > { %p1050_p4 = pneg %p1049_p3 }
  0x2c   : > { %p1055_p10 = pnand %p1054_p8, %p1050_p4 }
  0x2e   : > { %1058 = shalt.err (!%p1055_p10)
}
  0x2f   : > { %s1620_s10 = smov 128   ;;  %s1273_s27 = smov 8  }
  0x30   : > { %976 = dma.hbm_to_vmem [thread:$0]  (!%p1369_p13), %s238_s16, 512, %s240_s15, %s1380_s17, %s1620_s10, %s1620_s10, %s1273_s27  }
  0x31   : > { %p291_p1 = scmp.lt.s32.totalorder %s1270_s21, 3  ;;  %s1634_s0 = sld [smem:[#allocation22_spill]] }
  0x32   : > { %s209_s13 = scalar_lea.vmem [#allocation2], %s1367_s8  ;;  %s206_s1 = scalar_lea.sflag [#allocation3], %s1361_s6 }
  0x33   : > { %p1406_p3 = pnand %p925_p0, %p291_p1  ;;  %s217_s14 = sshll.u32 %s209_s13, 4  ;;  %s218_s14 = int_to_ptr.vmem [resolvable:$true] %s217_s14 }
  0x37   : > { %s214_s26 = scalar_lea.hbm %s1634_s0, %s1364_s7  ;;  %s1081_s23 = scalar_lea.hbm %s1634_s0, 64 }
  0x38   : > { %s215_s12 = sshll.u32 %s214_s26, 4  ;;  %s216_s12 = int_to_ptr.hbm [resolvable:$true] %s215_s12 }
  0x39   : > { %s1074_s20 = sshra.s32 %s216_s12, 4  ;;  %s1075_s20 = int_to_ptr.hbm [resolvable:$true] %s1074_s20 }
  0x3a   : > { %s1076_s24 = scalar_lea.hbm %s1075_s20, 32  ;;  %p1082_p0 = scmp.lt.s32.totalorder %s1075_s20, %s1634_s0 }
  0x3b   : > { %p1077_p4 = scmp.ne.s32.totalorder %s1075_s20, %s1076_s24  ;;  %p1083_p8 = scmp.lt.s32.totalorder %s1081_s23, %s1076_s24 }
  0x3d   : > { %p1079_p5 = pnand %p1077_p4, %p1048_p2  ;;  %p1084_p10 = por %p1083_p8, %p1082_p0 }
  0x3f   : > { %p1080_p7 = pneg %p1079_p5 }
  0x41   : > { %p1085_p1 = pnand %p1084_p10, %p1080_p7 }
  0x43   : > { %1088 = shalt.err (!%p1085_p1)
}
  0x44   : > { %s1636_s26 = smov 128   ;;  %s258_s16 = scalar_lea.hbm %s1613_s2, %s1364_s7 }
  0x45   : > { %973 = dma.hbm_to_vmem [thread:$0]  (!%p1369_p13), %s216_s12, 512, %s218_s14, %s206_s1, %s1636_s26, %s1636_s26, %s1273_s27  }
  0x46   : > { %s253_s21 = scalar_lea.vmem [#allocation7], %s1367_s8  ;;  %s259_s20 = sshll.u32 %s258_s16, 4  ;;  %s260_s20 = int_to_ptr.hbm [resolvable:$true] %s259_s20 }
  0x47   : > { %s261_s10 = sshll.u32 %s253_s21, 4  ;;  %s1104_s24 = sshra.s32 %s260_s20, 4  ;;  %s262_s10 = int_to_ptr.vmem [resolvable:$true] %s261_s10  ;;  %s1105_s24 = int_to_ptr.hbm [resolvable:$true] %s1104_s24 }
  0x48   : > { %s1106_s23 = scalar_lea.hbm %s1105_s24, 32  ;;  %s1111_s1 = scalar_lea.hbm %s1613_s2, 64 }
  0x49   : > { %p1107_p4 = scmp.ne.s32.totalorder %s1105_s24, %s1106_s23  ;;  %p1112_p0 = scmp.lt.s32.totalorder %s1105_s24, %s1613_s2 }
  0x4a   : > { %p1113_p8 = scmp.lt.s32.totalorder %s1111_s1, %s1106_s23 }
  0x4b   : > { %p1109_p5 = pnand %p1107_p4, %p1048_p2 }
  0x4c   : > { %p1114_p10 = por %p1113_p8, %p1112_p0 }
  0x4d   : > { %p1110_p7 = pneg %p1109_p5 }
  0x4f   : > { %p1115_p1 = pnand %p1114_p10, %p1110_p7 }
  0x51   : > { %1118 = shalt.err (!%p1115_p1)
}
  0x52   : > { %979 = dma.hbm_to_vmem [thread:$0]  (!%p1369_p13), %s260_s20, 512, %s262_s10, %s1380_s17, %s1636_s26, %s1636_s26, %s1273_s27  }
  0x53   : > { %s280_s13 = scalar_lea.hbm %s1614_s3, %s1364_s7  ;;  %s275_s16 = scalar_lea.vmem [#allocation8], %s1367_s8 }
  0x54   : > { %s281_s15 = sshll.u32 %s280_s13, 4  ;;  %s283_s24 = sshll.u32 %s275_s16, 4  ;;  %s282_s15 = int_to_ptr.hbm [resolvable:$true] %s281_s15  ;;  %s284_s24 = int_to_ptr.vmem [resolvable:$true] %s283_s24 }
  0x55   : > { %s272_s23 = scalar_lea.sflag [#allocation9], %s1361_s6  ;;  %s1134_s25 = sshra.s32 %s282_s15, 4  ;;  %s1135_s25 = int_to_ptr.hbm [resolvable:$true] %s1134_s25 }
  0x56   : > { %s1136_s1 = scalar_lea.hbm %s1135_s25, 32  ;;  %s1141_s10 = scalar_lea.hbm %s1614_s3, 64 }
  0x57   : > { %p1137_p4 = scmp.ne.s32.totalorder %s1135_s25, %s1136_s1  ;;  %p1142_p0 = scmp.lt.s32.totalorder %s1135_s25, %s1614_s3 }
  0x58   : > { %p1143_p8 = scmp.lt.s32.totalorder %s1141_s10, %s1136_s1 }
  0x59   : > { %p1139_p5 = pnand %p1137_p4, %p1048_p2 }
  0x5a   : > { %p1144_p10 = por %p1143_p8, %p1142_p0 }
  0x5b   : > { %p1140_p7 = pneg %p1139_p5 }
  0x5d   : > { %p1145_p1 = pnand %p1144_p10, %p1140_p7 }
  0x5f   : > { %1148 = shalt.err (!%p1145_p1)
}
  0x60   : > { %982 = dma.hbm_to_vmem [thread:$0]  (!%p1369_p13), %s282_s15, 512, %s284_s24, %s272_s23, %s1636_s26, %s1636_s26, %s1273_s27  }
  0x61   : > { %295 = sbr.rel (%p1406_p3) target bundleno = 654 (0x28e), region = 36  ;;  %s1469_s6 = sand.u32 (!%p1406_p3), 1, %s1262_s19  }
  0x62   : > { %s1472_s8 = sshll.u32 (!%p1406_p3), %s1469_s6, 5  ;;  %s298_s14 = scalar_lea.sflag (!%p1406_p3), [#allocation3], %s1469_s6 }
  0x63   : > { %s301_s0 = scalar_lea.vmem (!%p1406_p3), [#allocation2], %s1472_s8 }
  0x66   : > { %1237 = dma.done.wait (%p1345_p6), %s298_s14, 512  }
  0x67   : > { %1239 = vsyncadd (%p1345_p6), %s298_s14, 4294966784  ;;  %s307_s27 = sand.u32 1, %s1327_s22   ;;  %s311_s11 = scalar_lea.vmem [#allocation5], %s1472_s8 }
  0x68   : > { %s308_s9 = scalar_lea.sflag [#allocation6], %s307_s27 }
  0x69   : > { %1241 = dma.done.wait (%p1345_p6), %s308_s9, 1024  }
  0x6a   : > { %1243 = vsyncadd (%p1345_p6), %s308_s9, 4294966272  ;;  %s1487_s26 = scalar_lea.vmem [#allocation7], %s1472_s8  ;;  %s328_s21 = scalar_lea.sflag [#allocation9], %s1469_s6 }
  0x6b   : > { %s1491_s13 = scalar_lea.vmem [#allocation8], %s1472_s8 }
  0x6c   : > { %1245 = dma.done.wait (%p1345_p6), %s328_s21, 512  }
  0x6d   : > { %1247 = vsyncadd (%p1345_p6), %s328_s21, 4294966784  ;;  %vm399_vm0 = vcmask 64512   ;;  %v387_v0 = vld [vmem:[%s311_s11] sm:$0xff]  ;;  %v389_v1 = vld [vmem:[%s311_s11 + $0x10] sm:$0xff]  ;;  %s1532_s28 = scalar_lea.vmem [#allocation11], %s1472_s8  ;;  %s956_s15 = sshll.u32 %s1327_s22, 5 }
  0x6e   : > { %v379_v2 = vld [vmem:[%s301_s0] sm:$0xff]  ;;  %932 = vmatpush.xpose.msk.msra.mxu0 %vm399_vm0, %v387_v0  ;;  %936 = vmatpush.xpose.msk.msra.mxu2 %vm399_vm0, %v389_v1  ;;  %v381_v4 = vld [vmem:[%s301_s0 + $0x10] sm:$0xff]  ;;  %v388_v5 = vld [vmem:[%s311_s11 + $0x8] sm:$0xff]  ;;  %s734_s23 = scalar_lea.hbm %s1616_s5, %s956_s15  ;;  %s735_s25 = sshll.u32 %s1532_s28, 4  ;;  %s736_s25 = int_to_ptr.vmem [resolvable:$true] %s735_s25 }
  0x6f   : > { %v383_v3 = vmul.f32 0.35355338, %v379_v2  ;;  %v390_v6 = vld [vmem:[%s311_s11 + $0x18] sm:$0xff]  ;;  %v385_v7 = vmul.f32 0.35355338, %v381_v4  ;;  %934 = vmatpush.xpose.msk.msra.mxu1 %vm399_vm0, %v388_v5  ;;  %v380_v8 = vld [vmem:[%s301_s0 + $0x8] sm:$0xff] }
  0x70   : > { %938 = vmatpush.xpose.msk.msra.mxu3 %vm399_vm0, %v390_v6  ;;  %v382_v9 = vld [vmem:[%s301_s0 + $0x18] sm:$0xff]  ;;  %v384_v10 = vmul.f32 0.35355338, %v380_v8  ;;  %v395_v12 = vld [vmem:[%s1491_s13] sm:$0xff]  ;;  %v396_v15 = vld [vmem:[%s1491_s13 + $0x8] sm:$0xff]  ;;  %s737_s1 = sshll.u32 %s734_s23, 4  ;;  %s738_s1 = int_to_ptr.hbm [resolvable:$true] %s737_s1 }
  0x71   : > { %v386_v11 = vmul.f32 0.35355338, %v382_v9  ;;  %933 = vmatmul.msk.f32.vlgmr.msra.gmra.mxu0 %vm399_vm0, %v383_v3  ;;  %937 = vmatmul.msk.f32.vlgmr.msra.gmra.mxu2 %vm399_vm0, %v385_v7  ;;  %v397_v18 = vld [vmem:[%s1491_s13 + $0x10] sm:$0xff]  ;;  %v398_v22 = vld [vmem:[%s1491_s13 + $0x18] sm:$0xff]  ;;  %v391_v48 = vld [vmem:[%s1487_s26] sm:$0xff]  ;;  %s706_s12 = scalar_lea.sflag [#allocation12], %s1469_s6 }
  0x72   : > { %935 = vmatmul.msk.f32.vlgmr.msra.gmra.mxu1 %vm399_vm0, %v384_v10  ;;  %618 = vmatpush.msrb.mxu0 %v391_v48  ;;  %v393_v49 = vld [vmem:[%s1487_s26 + $0x10] sm:$0xff]  ;;  %v392_v50 = vld [vmem:[%s1487_s26 + $0x8] sm:$0xff]  ;;  %v394_v51 = vld [vmem:[%s1487_s26 + $0x18] sm:$0xff]  ;;  %s1178_s17 = sshra.s32 %s738_s1, 4  ;;  %s1184_s14 = scalar_lea.hbm %s1616_s5, 64  ;;  %s1179_s17 = int_to_ptr.hbm [resolvable:$true] %s1178_s17 }
  0x73   : > { %939 = vmatmul.msk.f32.vlgmr.msra.gmra.mxu3 %vm399_vm0, %v386_v11  ;;  %664 = vmatpush.msrb.mxu2 %v393_v49  ;;  %s1180_s10 = scalar_lea.hbm %s1179_s17, 32  ;;  %p1185_p3 = scmp.lt.s32.totalorder %s1179_s17, %s1616_s5 }
  0x74   : > { %641 = vmatpush.msrb.mxu1 %v392_v50  ;;  %687 = vmatpush.msrb.mxu3 %v394_v51  ;;  %p1181_p6 = scmp.ne.s32.totalorder %s1179_s17, %s1180_s10  ;;  %p1186_p4 = scmp.lt.s32.totalorder %s1184_s14, %s1180_s10 }
  0x76   : > { %p1182_p13 = pnand %p1181_p6, %p1352_p11  ;;  %p1187_p5 = por %p1186_p4, %p1185_p3 }
  0x78   : > { %p1183_p2 = pneg %p1182_p13 }
  0x7a   : > { %p1188_p7 = pnand %p1187_p5, %p1183_p2 }
  0xee   : > { %v423_v13 = vpop.f32.mrf.mxu0 }
  0xef   : > { %v424_v14 = vadd.f32 %v423_v13, %v395_v12  ;;  %v449_v16 = vpop.f32.mrf.mxu1 }
  0xf0   : > { %v450_v19 = vadd.f32 %v449_v16, %v396_v15 }
  0xf1   : > { %v504_v17 = vsel %vm399_vm0, %v424_v14, -inf }
  0xf2   : > { %505 = vmax.xlane.f32.xlu1 %v504_v17  ;;  %v507_v25 = vsel %vm399_vm0, %v450_v19, -inf }
  0xf4   : > { %v475_v20 = vpop.f32.mrf.mxu2 }
  0xf5   : > { %v476_v21 = vadd.f32 %v475_v20, %v397_v18 }
  0xf6   : > { %v501_v23 = vpop.f32.mrf.mxu3 }
  0xf7   : > { %v510_v24 = vsel %vm399_vm0, %v476_v21, -inf  ;;  %v502_v26 = vadd.f32 %v501_v23, %v398_v22 }
  0xf8   : > { %511 = vmax.xlane.f32.xlu0 %v510_v24 }
  0xf9   : > { %v513_v27 = vsel %vm399_vm0, %v502_v26, -inf }
  0xfa   : > { %508 = vmax.xlane.f32.xlu1 %v507_v25 }
 0x100   : > { %514 = vmax.xlane.f32.xlu0 %v513_v27 }
 0x165   : > { %v506_v28 = vpop.xlane.xlu1 %505 }
 0x166   : > { %v516_v29 = vsub.f32 %v424_v14, %v506_v28 }
 0x168   : > { %v520_v30 = vmul.f32 1.442695, %v516_v29 }
 0x16a   : > { %1028 = vpow2.f32 %v520_v30 }
 0x16b   : > { %v512_v31 = vpop.xlane.xlu0 %511 }
 0x16c   : > { %v518_v32 = vsub.f32 %v476_v21, %v512_v31 }
 0x16d   : > { %v509_v33 = vpop.xlane.xlu1 %508 }
 0x16e   : > { %v524_v34 = vmul.f32 1.442695, %v518_v32  ;;  %v517_v35 = vsub.f32 %v450_v19, %v509_v33 }
 0x170   : > { %v1029_v36 = vpop.eup %1028  ;;  %1030 = vpow2.f32 %v524_v34  ;;  %v522_v37 = vmul.f32 1.442695, %v517_v35 }
 0x171   : > { %v528_v38 = vsel %vm399_vm0, %v1029_v36, 0.0 }
 0x172   : > { %1032 = vpow2.f32 %v522_v37  ;;  %529 = vadd.xlane.f32.xlu0 %v528_v38 }
 0x173   : > { %v515_v39 = vpop.xlane.xlu0 %514 }
 0x174   : > { %v519_v40 = vsub.f32 %v502_v26, %v515_v39 }
 0x176   : > { %v1514_v41 = vpop.eup %1030  ;;  %v526_v42 = vmul.f32 1.442695, %v519_v40 }
 0x177   : > { %v534_v43 = vsel %vm399_vm0, %v1514_v41, 0.0 }
 0x178   : > { %v1518_v44 = vpop.eup %1032  ;;  %1034 = vpow2.f32 %v526_v42  ;;  %535 = vadd.xlane.f32.xlu2 %v534_v43 }
 0x179   : > { %v531_v45 = vsel %vm399_vm0, %v1518_v44, 0.0 }
 0x17a   : > { %532 = vadd.xlane.f32.xlu1 %v531_v45 }
 0x17e   : > { %v1522_v46 = vpop.eup %1034 }
 0x17f   : > { %v537_v47 = vsel %vm399_vm0, %v1522_v46, 0.0 }
 0x180   : > { %538 = vadd.xlane.f32.xlu2 %v537_v47 }
 0x1e5   : > { %v530_v52 = vpop.xlane.xlu0 %529 }
 0x1e6   : > { %1036 = vrcp.f32 %v530_v52  ;;  %v551_v58 = vand.u32 2147483648, %v530_v52  ;;  %v549_v60 = vand.u32 2147483647, %v530_v52  ;;  %vm545_vm2 = vweird.f32 %v530_v52 }
 0x1e8   : > { %v552_v2 = vor.u32 1.1754944e-38, %v551_v58  ;;  %vm550_vm4 = vcmp.eq.f32.partialorder %v549_v60, 8.507059e+37 }
 0x1eb   : > { %v536_v53 = vpop.xlane.xlu2 %535 }
 0x1ec   : > { %v1037_v54 = vpop.eup %1036  ;;  %1038 = vrcp.f32 %v536_v53  ;;  %v579_v6 = vand.u32 2147483647, %v536_v53  ;;  %v581_v7 = vand.u32 2147483648, %v536_v53  ;;  %vm575_vm6 = vweird.f32 %v536_v53 }
 0x1ed   : > { %v541_v55 = vmul.f32 %v1037_v54, %v530_v52  ;;  %v533_v56 = vpop.xlane.xlu1 %532  ;;  %vm546_vm1 = vweird.f32 %v1037_v54 }
 0x1ee   : > { %1040 = vrcp.f32 %v533_v56  ;;  %vm547_vm3 = vmor %vm545_vm2, %vm546_vm1  ;;  %v566_v12 = vand.u32 2147483648, %v533_v56  ;;  %v564_v15 = vand.u32 2147483647, %v533_v56  ;;  %vm580_vm9 = vcmp.eq.f32.partialorder %v579_v6, 8.507059e+37 }
 0x1ef   : > { %v542_v57 = vsub.f32 1.0, %v541_v55  ;;  %v582_v17 = vor.u32 1.1754944e-38, %v581_v7  ;;  %vm560_vm10 = vweird.f32 %v533_v56 }
 0x1f0   : > { %v567_v21 = vor.u32 1.1754944e-38, %v566_v12  ;;  %vm565_vm12 = vcmp.eq.f32.partialorder %v564_v15, 8.507059e+37 }
 0x1f1   : > { %v543_v59 = vmul.f32 %v1037_v54, %v542_v57 }
 0x1f2   : > { %v1039_v61 = vpop.eup %1038 }
 0x1f3   : > { %v544_v62 = vadd.f32 %v1037_v54, %v543_v59  ;;  %v571_v63 = vmul.f32 %v1039_v61, %v536_v53  ;;  %v539_v0 = vpop.xlane.xlu2 %538  ;;  %vm576_vm5 = vweird.f32 %v1039_v61 }
 0x1f4   : > { %v1041_v1 = vpop.eup %1040  ;;  %1042 = vrcp.f32 %v539_v0  ;;  %vm577_vm8 = vmor %vm575_vm6, %vm576_vm5  ;;  %v596_v26 = vand.u32 2147483648, %v539_v0  ;;  %v594_v29 = vand.u32 2147483647, %v539_v0  ;;  %vm590_vm14 = vweird.f32 %v539_v0 }
 0x1f5   : > { %v548_v3 = vsel %vm547_vm3, %v1037_v54, %v544_v62  ;;  %v572_v4 = vsub.f32 1.0, %v571_v63  ;;  %v556_v5 = vmul.f32 %v1041_v1, %v533_v56  ;;  %vm561_vm7 = vweird.f32 %v1041_v1 }
 0x1f6   : > { %v553_v8 = vsel %vm550_vm4, %v552_v2, %v548_v3  ;;  %vm562_vm11 = vmor %vm560_vm10, %vm561_vm7  ;;  %v597_v32 = vor.u32 1.1754944e-38, %v596_v26  ;;  %vm595_vm1 = vcmp.eq.f32.partialorder %v594_v29, 8.507059e+37 }
 0x1f7   : > { %v573_v9 = vmul.f32 %v1039_v61, %v572_v4  ;;  %v557_v10 = vsub.f32 1.0, %v556_v5  ;;  %v554_v11 = vmul.f32 %v1029_v36, %v553_v8 }
 0x1f9   : > { %v574_v13 = vadd.f32 %v1039_v61, %v573_v9  ;;  %v558_v14 = vmul.f32 %v1041_v1, %v557_v10  ;;  %940 = vmatmul.msk.f32.vlgmr.msrb.gmra.mxu0 %vm399_vm0, %v554_v11  ;;  %692 = vst.msk [vmem:[%s1532_s28] sm:$0xff] %vm399_vm0, %v554_v11 }
 0x1fa   : > { %v1043_v16 = vpop.eup %1042 }
 0x1fb   : > { %v559_v18 = vadd.f32 %v1041_v1, %v558_v14  ;;  %v586_v19 = vmul.f32 %v1043_v16, %v539_v0  ;;  %v578_v20 = vsel %vm577_vm8, %v1039_v61, %v574_v13  ;;  %vm591_vm13 = vweird.f32 %v1043_v16 }
 0x1fc   : > { %v583_v22 = vsel %vm580_vm9, %v582_v17, %v578_v20  ;;  %vm592_vm15 = vmor %vm590_vm14, %vm591_vm13 }
 0x1fd   : > { %v563_v23 = vsel %vm562_vm11, %v1041_v1, %v559_v18  ;;  %v587_v24 = vsub.f32 1.0, %v586_v19  ;;  %v584_v25 = vmul.f32 %v1514_v41, %v583_v22 }
 0x1fe   : > { %v568_v27 = vsel %vm565_vm12, %v567_v21, %v563_v23 }
 0x1ff   : > { %v588_v28 = vmul.f32 %v1043_v16, %v587_v24  ;;  %942 = vmatmul.msk.f32.vlgmr.msrb.gmra.mxu2 %vm399_vm0, %v584_v25  ;;  %694 = vst.msk [vmem:[%s1532_s28 + $0x10] sm:$0xff] %vm399_vm0, %v584_v25  ;;  %v569_v30 = vmul.f32 %v1518_v44, %v568_v27 }
 0x201   : > { %v589_v31 = vadd.f32 %v1043_v16, %v588_v28  ;;  %941 = vmatmul.msk.f32.vlgmr.msrb.gmra.mxu1 %vm399_vm0, %v569_v30  ;;  %693 = vst.msk [vmem:[%s1532_s28 + $0x8] sm:$0xff] %vm399_vm0, %v569_v30 }
 0x203   : > { %v593_v33 = vsel %vm592_vm15, %v1043_v16, %v589_v31 }
 0x204   : > { %v598_v34 = vsel %vm595_vm1, %v597_v32, %v593_v33 }
 0x205   : > { %v599_v35 = vmul.f32 %v1522_v46, %v598_v34 }
 0x207   : > { %943 = vmatmul.msk.f32.vlgmr.msrb.gmra.mxu3 %vm399_vm0, %v599_v35  ;;  %695 = vst.msk [vmem:[%s1532_s28 + $0x18] sm:$0xff] %vm399_vm0, %v599_v35 }
 0x208   : > { %1191 = shalt.err (!%p1188_p7)
}
 0x209   : > { %s1274_s9 = smov 128   ;;  %s1275_s11 = smov 8  }
 0x20a   : > { %967 = dma.vmem_to_hbm [thread:$0]  (%p1352_p11), %s736_s25, 512, %s738_s1, %s706_s12, %s1274_s9, %s1274_s9, %s1275_s11  }
 0x20b   : > { %s371_s26 = scalar_lea.vmem [#allocation10], %s1472_s8  ;;  %s717_s28 = scalar_lea.hbm %s1615_s4, %s956_s15 }
 0x20c   : > { %s718_s16 = sshll.u32 %s371_s26, 4  ;;  %s720_s24 = sshll.u32 %s717_s28, 4  ;;  %s719_s16 = int_to_ptr.vmem [resolvable:$true] %s718_s16  ;;  %s721_s24 = int_to_ptr.hbm [resolvable:$true] %s720_s24 }
 0x20d   : > { %s701_s8 = scalar_lea.sflag [#allocation4], %s1469_s6  ;;  %s1206_s23 = sshra.s32 %s721_s24, 4  ;;  %s1207_s23 = int_to_ptr.hbm [resolvable:$true] %s1206_s23 }
 0x20e   : > { %s1208_s25 = scalar_lea.hbm %s1207_s23, 32  ;;  %s1212_s12 = scalar_lea.hbm %s1615_s4, 64 }
 0x20f   : > { %p1209_p0 = scmp.ne.s32.totalorder %s1207_s23, %s1208_s25  ;;  %p1213_p1 = scmp.lt.s32.totalorder %s1207_s23, %s1615_s4 }
 0x210   : > { %p1214_p6 = scmp.lt.s32.totalorder %s1212_s12, %s1208_s25 }
 0x211   : > { %p1210_p8 = pnand %p1209_p0, %p1352_p11 }
 0x212   : > { %p1215_p13 = por %p1214_p6, %p1213_p1 }
 0x213   : > { %p1211_p10 = pneg %p1210_p8 }
 0x215   : > { %p1216_p2 = pnand %p1215_p13, %p1211_p10 }
 0x276   : > { %v620_v36 = vpop.f32.mrf.mxu0 }
 0x277   : > { %696 = vst.msk [vmem:[%s371_s26] sm:$0xff] %vm399_vm0, %v620_v36 }
 0x27e   : > { %v643_v37 = vpop.f32.mrf.mxu1 }
 0x27f   : > { %697 = vst.msk [vmem:[%s371_s26 + $0x8] sm:$0xff] %vm399_vm0, %v643_v37 }
 0x282   : > { %v666_v38 = vpop.f32.mrf.mxu2 }
 0x283   : > { %698 = vst.msk [vmem:[%s371_s26 + $0x10] sm:$0xff] %vm399_vm0, %v666_v38 }
 0x28a   : > { %v689_v39 = vpop.f32.mrf.mxu3 }
 0x28b   : > { %699 = vst.msk [vmem:[%s371_s26 + $0x18] sm:$0xff] %vm399_vm0, %v689_v39 }
 0x28c   : > { %1219 = shalt.err (!%p1216_p2)
}
 0x28d   : > { %966 = dma.vmem_to_hbm [thread:$0]  (%p1352_p11), %s719_s16, 512, %s721_s24, %s701_s8, %s1274_s9, %s1274_s9, %s1275_s11  }
 0x28e PF: > { %s752_s10 = sand.u32 1, %s1258_s18   ;;  %p984_p3 = pnand %p912_p9, %p1356_p12 }
 0x28f   : > { %s753_s20 = scalar_lea.sflag [#allocation4], %s752_s10 }
 0x290   : > { %p985_p4 = pneg %p984_p3 }
 0x292   : > { %1249 = dma.done.wait (%p985_p4), %s753_s20, 512  }
 0x293   : > { %1251 = vsyncadd (%p985_p4), %s753_s20, 4294966784  ;;  %s763_s7 = scalar_lea.sflag [#allocation12], %s752_s10 }
 0x294   : > { %1253 = dma.done.wait (%p985_p4), %s763_s7, 512  }
 0x295   : > { %1255 = vsyncadd (%p985_p4), %s763_s7, 4294966784  ;;  %s1638_s21 = sld [smem:[#allocation20_spill]]  ;;  %s1641_s18 = smov %s1262_s19 }
 0x296   : > { %s1639_s29 = sld [smem:[#allocation18_spill]] }
 0x297   : > { %s1640_s20 = sld [smem:[#allocation21_spill]] }
 0x29b   : > { %p28_p11 = scmp.ge.s32.totalorder %s1638_s21, 4  }
 0x29c   : > { %s1642_s19 = smov %s1639_s29 }
 0x29d   :  { %30 = sbr.rel (!%p28_p11) target bundleno = 14 (0xe), region = 135 }
 0x2a2   :  { %769 = vsyncpa [#allocation3], 1 }
 0x2a3   :  { %771 = vsyncpa [#allocation3 + $0x1], 1 }
 0x2a4   :  { %772 = vsyncpa [#allocation6], 1 }
 0x2a5   :  { %774 = vsyncpa [#allocation6 + $0x1], 1 }
 0x2a6   :  { %775 = vsyncpa [#allocation9], 1 }
 0x2a7   :  { %777 = vsyncpa [#allocation9 + $0x1], 1 }
 0x2a8   :  { %778 = vsyncpa [#allocation4], 1 }
 0x2a9   :  { %780 = vsyncpa [#allocation4 + $0x1], 1 }
 0x2aa   :  { %781 = vsyncpa [#allocation12], 1 }
 0x2ab   :  { %783 = vsyncpa [#allocation12 + $0x1], 1 }

</bundles_post_ra>
